<compile_context>
chip_gen: v7x
topology: tpu7x:2x2x1
jax: 0.10.0
libtpu: 0.0.40
codegen_flags: <defaults>
</compile_context>

<pallas_src>
import functools

import jax
import jax.numpy as jnp
from jax import lax
from jax.experimental import pallas as pl
from jax.experimental.pallas import tpu as pltpu


def _round_up(x, m):
    return ((x + m - 1) // m) * m


def _feature_loss_kernel(tile_rows, valid_rows, needs_row_mask,
                         yp_ref, yt_ref, wt_ref, b_ref, out_ref):
    """One row tile: proj = y_true @ W^T + b; emit sublane-reduced (y_pred-proj)^2."""
    # MXU matmul in the operands' native dtype, f32 accumulation.
    proj = jnp.dot(yt_ref[...], wt_ref[...],
                   preferred_element_type=jnp.float32)
    proj = proj + b_ref[...].astype(jnp.float32)
    diff = yp_ref[...].astype(jnp.float32) - proj      # VPU, f32
    sq = diff * diff                                   # (tile_rows, n_pad)

    if needs_row_mask:  # static flag: only the ragged-batch case pays for this
        i = pl.program_id(0)
        row_ids = i * tile_rows + lax.broadcasted_iota(jnp.int32, sq.shape, 0)
        sq = jnp.where(row_ids < valid_rows, sq, 0.0)

    n_pad = sq.shape[1]
    # Reduce only along the sublane-major axis: pure vreg adds, no XLU, no SMEM.
    partial = sq.reshape(tile_rows // 8, 8, n_pad).sum(axis=0)   # (8, n_pad)
    out_ref[...] = partial                                       # lane-dense store


def feature_loss(y_pred, y_true, weight, bias, alpha, *, tile_rows=256):
    """alpha * MSELoss()(y_pred, y_true @ weight.T + bias)."""
    B, student_dim = y_pred.shape
    B2, teacher_dim = y_true.shape
    assert B == B2
    assert weight.shape == (student_dim, teacher_dim)
    assert bias.shape == (student_dim,)

    # ---- tiling / padding (glue, done once outside the hot loop) ----
    n_pad = _round_up(student_dim, 128)          # lane-dense student width
    k_pad = _round_up(teacher_dim, 128)          # lane-dense teacher width
    tile_rows = max(8, min(_round_up(tile_rows, 8), _round_up(B, 8)))
    b_pad = _round_up(B, tile_rows)
    num_tiles = b_pad // tile_rows
    needs_row_mask = b_pad != B

    # Zero padding: padded feature columns contribute exactly 0 to the squared
    # error (W^T / bias pads are zero); padded rows are masked in-kernel.
    yp = jnp.pad(y_pred, ((0, b_pad - B), (0, n_pad - student_dim)))
    yt = jnp.pad(y_true, ((0, b_pad - B), (0, k_pad - teacher_dim)))
    w_t = jnp.pad(weight.T, ((0, k_pad - teacher_dim), (0, n_pad - student_dim)))
    b2 = jnp.pad(bias, (0, n_pad - student_dim)).reshape(1, n_pad)

    def _isz(a):
        return jnp.dtype(a.dtype).itemsize

    # ---- explicit VMEM budget (conservative: everything double-buffered) ----
    vmem_need = (2 * tile_rows * n_pad * _isz(yp)
                 + 2 * tile_rows * k_pad * _isz(yt)
                 + 2 * k_pad * n_pad * _isz(w_t)
                 + 2 * n_pad * _isz(b2)
                 + 2 * 8 * n_pad * 4)
    vmem_limit = int(min(max(2 * vmem_need, 32 * 1024 * 1024),
                         64 * 1024 * 1024))      # stay <= v7x per-TC VMEM

    cost = pl.CostEstimate(
        flops=2 * b_pad * k_pad * n_pad + 3 * b_pad * n_pad,
        transcendentals=0,
        bytes_accessed=int(yp.size * _isz(yp) + yt.size * _isz(yt)
                           + w_t.size * _isz(w_t) + b2.size * _isz(b2)
                           + num_tiles * 8 * n_pad * 4),
    )

    kernel = functools.partial(_feature_loss_kernel, tile_rows, B,
                               needs_row_mask)

    def _make_call(single_buffer_resident):
        if single_buffer_resident:
            # Constant index map -> single buffer halves resident VMEM cost.
            w_spec = pl.BlockSpec((k_pad, n_pad), lambda i: (0, 0),
                                  pipeline_mode=pl.Buffered(1))
            bias_spec = pl.BlockSpec((1, n_pad), lambda i: (0, 0),
                                     pipeline_mode=pl.Buffered(1))
        else:
            w_spec = pl.BlockSpec((k_pad, n_pad), lambda i: (0, 0))
            bias_spec = pl.BlockSpec((1, n_pad), lambda i: (0, 0))
        return pl.pallas_call(
            kernel,
            out_shape=jax.ShapeDtypeStruct((num_tiles, 8, n_pad), jnp.float32),
            grid_spec=pltpu.PrefetchScalarGridSpec(
                num_scalar_prefetch=0,
                grid=(num_tiles,),
                in_specs=[
                    pl.BlockSpec((tile_rows, n_pad), lambda i: (i, 0)),  # y_pred
                    pl.BlockSpec((tile_rows, k_pad), lambda i: (i, 0)),  # y_true
                    w_spec,      # W^T (resident)
                    bias_spec,   # bias (resident)
                ],
                out_specs=pl.BlockSpec((None, 8, n_pad), lambda i: (i, 0, 0)),
            ),
            compiler_params=pltpu.CompilerParams(
                dimension_semantics=("parallel",),   # independent row tiles
                vmem_limit_bytes=vmem_limit),
            cost_estimate=cost,
        )

    try:
        partials = _make_call(True)(yp, yt, w_t, b2)
    except Exception:
        # Fallback: jax build without single-buffer pipeline_mode support.
        partials = _make_call(False)(yp, yt, w_t, b2)

    # Tiny cross-tile reduction + scaling (num_tiles * 8 * n_pad f32 values).
    n_elems = B * student_dim
    return (jnp.float32(alpha) / jnp.float32(n_elems)) * jnp.sum(partials)


if __name__ == "__main__":
    # Small shapes consistent with the module: Linear(teacher_dim, student_dim)
    B, teacher_dim, student_dim = 16, 32, 16
    alpha = 0.5

    key = jax.random.PRNGKey(0)
    k1, k2, k3, k4 = jax.random.split(key, 4)

    y_pred = jax.random.normal(k1, (B, student_dim), dtype=jnp.float32)
    y_true = jax.random.normal(k2, (B, teacher_dim), dtype=jnp.float32)
    weight = jax.random.normal(k3, (student_dim, teacher_dim), dtype=jnp.float32) * 0.1
    bias = jax.random.normal(k4, (student_dim,), dtype=jnp.float32) * 0.1

    loss = feature_loss(y_pred, y_true, weight, bias, alpha)
    loss = jax.block_until_ready(loss)

    # Pure-JAX reference (MSELoss = mean over all elements)
    proj_ref = y_true @ weight.T + bias
    ref = alpha * jnp.mean((y_pred - proj_ref) ** 2)
    assert jnp.allclose(loss, ref, rtol=1e-5, atol=1e-6), (loss, ref)

    # Ragged batch size (exercises the masked tail-tile path).
    Br = 20
    y_pred2 = jax.random.normal(k1, (Br, student_dim), dtype=jnp.float32)
    y_true2 = jax.random.normal(k2, (Br, teacher_dim), dtype=jnp.float32)
    loss2 = jax.block_until_ready(
        feature_loss(y_pred2, y_true2, weight, bias, alpha))
    ref2 = alpha * jnp.mean((y_pred2 - (y_true2 @ weight.T + bias)) ** 2)
    assert jnp.allclose(loss2, ref2, rtol=1e-5, atol=1e-6), (loss2, ref2)

    print("KERNEL_OK")
</pallas_src>

<mosaic_0001>
module attributes {stable_mosaic.version = 11 : i64} {
  func.func @_feature_loss_kernel(%arg0: i32, %arg1: memref<16x128xf32, #tpu.memory_space<vmem>>, %arg2: memref<16x128xf32, #tpu.memory_space<vmem>>, %arg3: memref<128x128xf32, #tpu.memory_space<vmem>>, %arg4: memref<1x128xf32, #tpu.memory_space<vmem>>, %arg5: memref<1x8x128xf32, #tpu.memory_space<vmem>>) attributes {dimension_semantics = [#tpu.dimension_semantics<parallel>], iteration_bounds = array<i64: 1>, scalar_prefetch = 0 : i64, scratch_operands = 0 : i64, tpu.core_type = #tpu.core_type<tc>, window_params = [{transform_indices = @transform_0, window_bounds = array<i64: 16, 128>}, {transform_indices = @transform_1, window_bounds = array<i64: 16, 128>}, {pipeline_mode = #tpu.pipeline_mode<synchronous>, transform_indices = @transform_2, window_bounds = array<i64: 128, 128>}, {pipeline_mode = #tpu.pipeline_mode<synchronous>, transform_indices = @transform_3, window_bounds = array<i64: 1, 128>}, {transform_indices = @transform_4, window_bounds = array<i64: 1, 8, 128>}]} {
    %c0 = arith.constant 0 : index
    %c0_0 = arith.constant 0 : index
    %0 = vector.load %arg2[%c0, %c0_0] : memref<16x128xf32, #tpu.memory_space<vmem>>, vector<16x128xf32>
    %c0_1 = arith.constant 0 : index
    %c0_2 = arith.constant 0 : index
    %1 = vector.load %arg3[%c0_1, %c0_2] : memref<128x128xf32, #tpu.memory_space<vmem>>, vector<128x128xf32>
    %cst = arith.constant dense<0.000000e+00> : vector<16x128xf32>
    %2 = tpu.matmul %0, %1, %cst {dimension_numbers = #tpu.dot_dimension_numbers<[1], [0], [0], [1], [0, 0, 1, 1], [], []>} : vector<16x128xf32>, vector<128x128xf32>, vector<16x128xf32> -> vector<16x128xf32>
    %c0_3 = arith.constant 0 : index
    %c0_4 = arith.constant 0 : index
    %3 = vector.load %arg4[%c0_3, %c0_4] : memref<1x128xf32, #tpu.memory_space<vmem>>, vector<1x128xf32>
    %4 = vector.broadcast %3 : vector<1x128xf32> to vector<16x128xf32>
    %5 = arith.addf %2, %4 : vector<16x128xf32>
    %c0_5 = arith.constant 0 : index
    %c0_6 = arith.constant 0 : index
    %6 = vector.load %arg1[%c0_5, %c0_6] : memref<16x128xf32, #tpu.memory_space<vmem>>, vector<16x128xf32>
    %7 = arith.subf %6, %5 : vector<16x128xf32>
    %8 = arith.mulf %7, %7 : vector<16x128xf32>
    %9 = vector.shape_cast %8 : vector<16x128xf32> to vector<2x8x128xf32>
    %cst_7 = arith.constant dense<0.000000e+00> : vector<8x128xf32>
    %10 = vector.multi_reduction <add>, %9, %cst_7 [0] : vector<2x8x128xf32> to vector<8x128xf32>
    %c0_8 = arith.constant 0 : index
    %c0_9 = arith.constant 0 : index
    %c0_10 = arith.constant 0 : index
    %11 = vector.load %arg5[%c0_8, %c0_9, %c0_10] : memref<1x8x128xf32, #tpu.memory_space<vmem>>, vector<1x8x128xf32>
    %12 = vector.shape_cast %11 : vector<1x8x128xf32> to vector<8x128xf32>
    %13 = vector.shape_cast %10 : vector<8x128xf32> to vector<1x8x128xf32>
    tpu.vector_store %arg5[%c0_8, %c0_9, %c0_10], %13 {strides = array<i32>} : memref<1x8x128xf32, #tpu.memory_space<vmem>>, vector<1x8x128xf32>,
    return
  }
  func.func @transform_0(%arg0: i32) -> (i32, i32) {
    %c0_i32 = arith.constant 0 : i32
    %c0_i32_0 = arith.constant 0 : i32
    return %arg0, %c0_i32 : i32, i32
  }
  func.func @transform_1(%arg0: i32) -> (i32, i32) {
    %c0_i32 = arith.constant 0 : i32
    %c0_i32_0 = arith.constant 0 : i32
    return %arg0, %c0_i32 : i32, i32
  }
  func.func @transform_2(%arg0: i32) -> (i32, i32) {
    %c0_i32 = arith.constant 0 : i32
    %c0_i32_0 = arith.constant 0 : i32
    %c0_i32_1 = arith.constant 0 : i32
    return %c0_i32, %c0_i32_0 : i32, i32
  }
  func.func @transform_3(%arg0: i32) -> (i32, i32) {
    %c0_i32 = arith.constant 0 : i32
    %c0_i32_0 = arith.constant 0 : i32
    %c0_i32_1 = arith.constant 0 : i32
    return %c0_i32, %c0_i32_0 : i32, i32
  }
  func.func @transform_4(%arg0: i32) -> (i32, i32, i32) {
    %c0_i32 = arith.constant 0 : i32
    %c0_i32_0 = arith.constant 0 : i32
    %c0_i32_1 = arith.constant 0 : i32
    return %arg0, %c0_i32, %c0_i32_0 : i32, i32, i32
  }
}

module attributes {stable_mosaic.version = 11 : i64} {
  func.func @_feature_loss_kernel(%arg0: i32, %arg1: memref<16x128xf32, #tpu.memory_space<vmem>>, %arg2: memref<16x128xf32, #tpu.memory_space<vmem>>, %arg3: memref<128x128xf32, #tpu.memory_space<vmem>>, %arg4: memref<1x128xf32, #tpu.memory_space<vmem>>, %arg5: memref<1x8x128xf32, #tpu.memory_space<vmem>>) attributes {dimension_semantics = [#tpu.dimension_semantics<parallel>], iteration_bounds = array<i64: 1>, scalar_prefetch = 0 : i64, scratch_operands = 0 : i64, tpu.core_type = #tpu.core_type<tc>, window_params = [{transform_indices = @transform_0, window_bounds = array<i64: 16, 128>}, {transform_indices = @transform_1, window_bounds = array<i64: 16, 128>}, {pipeline_mode = #tpu.pipeline_mode<synchronous>, transform_indices = @transform_2, window_bounds = array<i64: 128, 128>}, {pipeline_mode = #tpu.pipeline_mode<synchronous>, transform_indices = @transform_3, window_bounds = array<i64: 1, 128>}, {transform_indices = @transform_4, window_bounds = array<i64: 1, 8, 128>}]} {
    %c0 = arith.constant 0 : index
    %c0_0 = arith.constant 0 : index
    %0 = vector.load %arg2[%c0, %c0_0] : memref<16x128xf32, #tpu.memory_space<vmem>>, vector<16x128xf32>
    %c0_1 = arith.constant 0 : index
    %c0_2 = arith.constant 0 : index
    %1 = vector.load %arg3[%c0_1, %c0_2] : memref<128x128xf32, #tpu.memory_space<vmem>>, vector<128x128xf32>
    %cst = arith.constant dense<0.000000e+00> : vector<16x128xf32>
    %2 = tpu.matmul %0, %1, %cst {dimension_numbers = #tpu.dot_dimension_numbers<[1], [0], [0], [1], [0, 0, 1, 1], [], []>} : vector<16x128xf32>, vector<128x128xf32>, vector<16x128xf32> -> vector<16x128xf32>
    %c0_3 = arith.constant 0 : index
    %c0_4 = arith.constant 0 : index
    %3 = vector.load %arg4[%c0_3, %c0_4] : memref<1x128xf32, #tpu.memory_space<vmem>>, vector<1x128xf32>
    %4 = vector.broadcast %3 : vector<1x128xf32> to vector<16x128xf32>
    %5 = arith.addf %2, %4 : vector<16x128xf32>
    %c0_5 = arith.constant 0 : index
    %c0_6 = arith.constant 0 : index
    %6 = vector.load %arg1[%c0_5, %c0_6] : memref<16x128xf32, #tpu.memory_space<vmem>>, vector<16x128xf32>
    %7 = arith.subf %6, %5 : vector<16x128xf32>
    %8 = arith.mulf %7, %7 : vector<16x128xf32>
    %9 = vector.shape_cast %8 : vector<16x128xf32> to vector<2x8x128xf32>
    %cst_7 = arith.constant dense<0.000000e+00> : vector<8x128xf32>
    %10 = vector.multi_reduction <add>, %9, %cst_7 [0] : vector<2x8x128xf32> to vector<8x128xf32>
    %c0_8 = arith.constant 0 : index
    %c0_9 = arith.constant 0 : index
    %c0_10 = arith.constant 0 : index
    %11 = vector.load %arg5[%c0_8, %c0_9, %c0_10] : memref<1x8x128xf32, #tpu.memory_space<vmem>>, vector<1x8x128xf32>
    %12 = vector.shape_cast %11 : vector<1x8x128xf32> to vector<8x128xf32>
    %13 = vector.shape_cast %10 : vector<8x128xf32> to vector<1x8x128xf32>
    tpu.vector_store %arg5[%c0_8, %c0_9, %c0_10], %13 {strides = array<i32>} : memref<1x8x128xf32, #tpu.memory_space<vmem>>, vector<1x8x128xf32>,
    return
  }
  func.func @transform_0(%arg0: i32) -> (i32, i32) {
    %c0_i32 = arith.constant 0 : i32
    %c0_i32_0 = arith.constant 0 : i32
    return %arg0, %c0_i32 : i32, i32
  }
  func.func @transform_1(%arg0: i32) -> (i32, i32) {
    %c0_i32 = arith.constant 0 : i32
    %c0_i32_0 = arith.constant 0 : i32
    return %arg0, %c0_i32 : i32, i32
  }
  func.func @transform_2(%arg0: i32) -> (i32, i32) {
    %c0_i32 = arith.constant 0 : i32
    %c0_i32_0 = arith.constant 0 : i32
    %c0_i32_1 = arith.constant 0 : i32
    return %c0_i32, %c0_i32_0 : i32, i32
  }
  func.func @transform_3(%arg0: i32) -> (i32, i32) {
    %c0_i32 = arith.constant 0 : i32
    %c0_i32_0 = arith.constant 0 : i32
    %c0_i32_1 = arith.constant 0 : i32
    return %c0_i32, %c0_i32_0 : i32, i32
  }
  func.func @transform_4(%arg0: i32) -> (i32, i32, i32) {
    %c0_i32 = arith.constant 0 : i32
    %c0_i32_0 = arith.constant 0 : i32
    %c0_i32_1 = arith.constant 0 : i32
    return %arg0, %c0_i32, %c0_i32_0 : i32, i32, i32
  }
}

</mosaic_0001>

<bundles_post_ra>
// kernel: tpu_custom_call.1
= control target key start
LH: loop header
LB: loop body
LE: loop exit
PB: predicated region body
PF: predicated region fallthrough
CT: control target
= control target key end

     0   :  { %9 = vsyncpa [#allocation3], 0  ;;  %s467_s0 = inlined_call_operand.hbm [shape: f32[16,128], index: 0, kind: input, shape index: {}]   ;;  %s468_s1 = inlined_call_operand.hbm [shape: f32[16,128], index: 1, kind: input, shape index: {}]   ;;  %s469_s2 = inlined_call_operand.hbm [shape: f32[128,128], index: 2, kind: input, shape index: {}]   ;;  %s470_s3 = inlined_call_operand.vmem [shape: f32[1,128], index: 3, kind: input, shape index: {}]   ;;  %s471_s4 = inlined_call_operand.hbm [shape: f32[1,8,128], index: 4, kind: output, shape index: {}]  }
   0x1   :  { %10 = vsyncpa [#allocation6], 0 }
   0x2   :  { %11 = vsyncpa [#allocation4], 0  ;;  %s369_s15 = smov [#allocation5]   ;;  %s370_s17 = smov [#allocation2]  }
   0x3   :  { %s29_s16 = sshll.u32 %s369_s15, 4  ;;  %s17_s18 = sshll.u32 %s370_s17, 4  ;;  %s30_s16 = int_to_ptr.vmem [resolvable:$true] %s29_s16  ;;  %s400_s18 = int_to_ptr.vmem [resolvable:$true] %s17_s18 }
   0x4   :  { %s275_s21 = scalar_lea.hbm %s468_s1, 256 }
   0x5   :  { %p276_p0 = scmp.ne.s32.totalorder %s468_s1, %s275_s21  ;;  %p279_p1 = scmp.lt.u32.totalorder %s275_s21, %s468_s1 }
   0x7   :  { %p281_p2 = pnand %p279_p1, %p276_p0 }
   0x9   :  { %284 = shalt.err (!%p281_p2)
}
   0xa   :  { %s285_s26 = scalar_lea.vmem %s30_s16, 256  ;;  %p290_p4 = scmp.lt.s32.totalorder %s30_s16, %s30_s16 }
   0xb   :  { %p286_p3 = scmp.ne.s32.totalorder %s30_s16, %s285_s26  ;;  %p291_p5 = scmp.lt.s32.totalorder %s285_s26, %s285_s26 }
   0xd   :  { %p292_p6 = por %p291_p5, %p290_p4 }
   0xf   :  { %p293_p7 = pnand %p292_p6, %p286_p3 }
  0x11   :  { %296 = shalt.err (!%p293_p7)
}
  0x12   :  { %s371_s27 = smov 128   ;;  %s372_s28 = smov 8  }
  0x13   :  { %35 = dma.hbm_to_vmem [thread:$0]  %s468_s1, 256, %s30_s16, [#allocation6], %s371_s27, %s371_s27, %s372_s28  }
  0x14   :  { %s297_s7 = scalar_lea.hbm %s467_s0, 256 }
  0x15   :  { %p298_p8 = scmp.ne.s32.totalorder %s467_s0, %s297_s7  ;;  %p301_p9 = scmp.lt.u32.totalorder %s297_s7, %s467_s0 }
  0x17   :  { %p303_p10 = pnand %p301_p9, %p298_p8 }
  0x19   :  { %306 = shalt.err (!%p303_p10)
}
  0x1a   :  { %s307_s12 = scalar_lea.vmem %s400_s18, 256  ;;  %p312_p12 = scmp.lt.s32.totalorder %s400_s18, %s400_s18 }
  0x1b   :  { %p308_p11 = scmp.ne.s32.totalorder %s400_s18, %s307_s12  ;;  %p313_p13 = scmp.lt.s32.totalorder %s307_s12, %s307_s12 }
  0x1d   :  { %p314_p0 = por %p313_p13, %p312_p12 }
  0x1f   :  { %p315_p1 = pnand %p314_p0, %p308_p11 }
  0x21   :  { %318 = shalt.err (!%p315_p1)
}
  0x22   :  { %23 = dma.hbm_to_vmem [thread:$0]  %s467_s0, 256, %s400_s18, [#allocation3], %s371_s27, %s371_s27, %s372_s28  }
  0x23   :  { %s373_s14 = smov [#allocation7]   ;;  %s319_s19 = scalar_lea.hbm %s469_s2, 2048 }
  0x24   :  { %s41_s15 = sshll.u32 %s373_s14, 4  ;;  %p320_p2 = scmp.ne.s32.totalorder %s469_s2, %s319_s19  ;;  %s42_s15 = int_to_ptr.vmem [resolvable:$true] %s41_s15 }
  0x25   :  { %p323_p3 = scmp.lt.u32.totalorder %s319_s19, %s469_s2 }
  0x27   :  { %p325_p4 = pnand %p323_p3, %p320_p2 }
  0x29   :  { %328 = shalt.err (!%p325_p4)
}
  0x2a   :  { %s329_s24 = scalar_lea.vmem %s42_s15, 2048  ;;  %p334_p6 = scmp.lt.s32.totalorder %s42_s15, %s42_s15 }
  0x2b   :  { %p330_p5 = scmp.ne.s32.totalorder %s42_s15, %s329_s24  ;;  %p335_p7 = scmp.lt.s32.totalorder %s329_s24, %s329_s24 }
  0x2d   :  { %p336_p8 = por %p335_p7, %p334_p6 }
  0x2f   :  { %p337_p9 = pnand %p336_p8, %p330_p5 }
  0x31   :  { %340 = shalt.err (!%p337_p9)
}
  0x32   :  { %47 = dma.hbm_to_vmem [thread:$0]  %s469_s2, 2048, %s42_s15, [#allocation6], %s371_s27, %s371_s27, %s372_s28  }
  0x33   :  { %363 = dma.done.wait [#allocation3], 256  }
  0x34   :  { %364 = vsyncadd [#allocation3], 4294967040 }
  0x35   :  { %365 = dma.done.wait [#allocation6], 2304  }
  0x36   :  { %366 = vsyncadd [#allocation6], 4294964992  ;;  %v61_v0 = vld [vmem:[#allocation7] sm:$0xff]  ;;  %v62_v1 = vld [vmem:[#allocation7 + $0x8] sm:$0xff]  ;;  %s374_s26 = smov [#allocation8]  }
  0x37   :  { %v63_v2 = vld [vmem:[#allocation7 + $0x10] sm:$0xff]  ;;  %v237_v3 = vpack.c.bf16 %v62_v1, %v61_v0  ;;  %v64_v4 = vld [vmem:[#allocation7 + $0x18] sm:$0xff]  ;;  %v65_v6 = vld [vmem:[#allocation7 + $0x20] sm:$0xff]  ;;  %s173_s27 = sshll.u32 %s374_s26, 4  ;;  %s174_s27 = int_to_ptr.vmem [resolvable:$true] %s173_s27 }
  0x38   :  { %v241_v5 = vpack.c.bf16 %v64_v4, %v63_v2  ;;  %v66_v7 = vld [vmem:[#allocation7 + $0x28] sm:$0xff]  ;;  %v59_v9 = vld [vmem:[#allocation5] sm:$0xff]  ;;  %v68_v11 = vld [vmem:[#allocation7 + $0x38] sm:$0xff]  ;;  %s341_s28 = scalar_lea.vmem %s174_s27, 128  ;;  %p346_p11 = scmp.lt.s32.totalorder %s174_s27, %s174_s27 }
  0x39   :  { %238 = vmatprep.subr.bf16.mxu0 %v237_v3  ;;  %v245_v8 = vpack.c.bf16 %v66_v7, %v65_v6  ;;  %v67_v10 = vld [vmem:[#allocation7 + $0x30] sm:$0xff]  ;;  %234 = vmatprep.mubr.f32.mxu0 %v59_v9  ;;  %v69_v13 = vld [vmem:[#allocation7 + $0x40] sm:$0xff]  ;;  %v70_v14 = vld [vmem:[#allocation7 + $0x48] sm:$0xff]  ;;  %p342_p10 = scmp.ne.s32.totalorder %s174_s27, %s341_s28  ;;  %p347_p12 = scmp.lt.s32.totalorder %s341_s28, %s341_s28 }
  0x3a   :  { %240 = vmatpush3.bf16.msra.mxu0 %v237_v3  ;;  %v249_v12 = vpack.c.bf16 %v68_v11, %v67_v10  ;;  %v253_v15 = vpack.c.bf16 %v70_v14, %v69_v13  ;;  %v71_v16 = vld [vmem:[#allocation7 + $0x50] sm:$0xff]  ;;  %v72_v17 = vld [vmem:[#allocation7 + $0x58] sm:$0xff]  ;;  %v73_v19 = vld [vmem:[#allocation7 + $0x60] sm:$0xff] }
  0x3b   :  { %242 = vmatprep.subr.bf16.mxu0 %v241_v5  ;;  %v257_v18 = vpack.c.bf16 %v72_v17, %v71_v16  ;;  %v74_v20 = vld [vmem:[#allocation7 + $0x68] sm:$0xff]  ;;  %v75_v22 = vld [vmem:[#allocation7 + $0x70] sm:$0xff]  ;;  %v76_v23 = vld [vmem:[#allocation7 + $0x78] sm:$0xff]  ;;  %p348_p13 = por %p347_p12, %p346_p11 }
  0x3c   :  { %v261_v21 = vpack.c.bf16 %v74_v20, %v73_v19  ;;  %v265_v24 = vpack.c.bf16 %v76_v23, %v75_v22  ;;  %v60_v25 = vld [vmem:[#allocation5 + $0x8] sm:$0xff]  ;;  %v183_v26 = vld [vmem:[%s470_s3] ss:$0 sm:$0xff]  ;;  %v160_v28 = vld [vmem:[#allocation2 + $0x8] sm:$0xff] }
  0x3d   :  { %v159_v31 = vld [vmem:[#allocation2] sm:$0xff]  ;;  %p349_p0 = pnand %p348_p13, %p342_p10 }
  0x3e   :  { %244 = vmatpush3.bf16.msra.mxu0 %v241_v5 }
  0x3f   :  { %246 = vmatprep.subr.bf16.mxu0 %v245_v8 }
  0x42   :  { %248 = vmatpush3.bf16.msra.mxu0 %v245_v8 }
  0x43   :  { %250 = vmatprep.subr.bf16.mxu0 %v249_v12 }
  0x46   :  { %252 = vmatpush3.bf16.msra.mxu0 %v249_v12 }
  0x47   :  { %254 = vmatprep.subr.bf16.mxu0 %v253_v15 }
  0x4a   :  { %256 = vmatpush3.bf16.msra.mxu0 %v253_v15 }
  0x4b   :  { %258 = vmatprep.subr.bf16.mxu0 %v257_v18 }
  0x4e   :  { %260 = vmatpush3.bf16.msra.mxu0 %v257_v18 }
  0x4f   :  { %262 = vmatprep.subr.bf16.mxu0 %v261_v21 }
  0x52   :  { %264 = vmatpush3.bf16.msra.mxu0 %v261_v21 }
  0x53   :  { %266 = vmatprep.subr.bf16.mxu0 %v265_v24 }
  0x56   :  { %268 = vmatpush3.bf16.msra.mxu0 %v265_v24 }
  0x59   :  { %235 = vmatmul.mubr.f32.vlgmr.msra.gmra.mrb[0].mxu0 %v60_v25 }
 0x12c   :  { %v236_v27 = vpop.f32.mrb[0].mxu0 }
 0x12d   :  { %v156_v29 = vadd.f32 %v236_v27, %v183_v26  ;;  %v150_v30 = vpop.f32.mrb[1].mxu0 }
 0x12e   :  { %v151_v32 = vadd.f32 %v183_v26, %v150_v30 }
 0x12f   :  { %v162_v33 = vsub.f32 %v160_v28, %v156_v29 }
 0x130   :  { %v161_v34 = vsub.f32 %v159_v31, %v151_v32 }
 0x131   :  { %v164_v35 = vmul.f32 %v162_v33, %v162_v33 }
 0x132   :  { %v163_v36 = vmul.f32 %v161_v34, %v161_v34 }
 0x134   :  { %v165_v37 = vadd.f32 %v164_v35, %v163_v36 }
 0x136   :  { %166 = vst [vmem:[#allocation8] sm:$0xff] %v165_v37 }
 0x137   :  { %352 = shalt.err (!%p349_p0)
}
 0x138   :  { %s353_s30 = scalar_lea.hbm %s471_s4, 128 }
 0x139   :  { %p354_p1 = scmp.ne.s32.totalorder %s471_s4, %s353_s30  ;;  %p357_p2 = scmp.lt.u32.totalorder %s353_s30, %s471_s4 }
 0x13b   :  { %p359_p3 = pnand %p357_p2, %p354_p1 }
 0x13d   :  { %362 = shalt.err (!%p359_p3)
}
 0x13e   :  { %176 = dma.vmem_to_hbm [thread:$0]  %s174_s27, 128, %s471_s4, [#allocation4]  }
 0x13f   :  { %367 = dma.done.wait [#allocation4], 128  }
 0x140   :  { %368 = vsyncadd [#allocation4], 4294967168 }
 0x141   :  { %180 = vsyncpa [#allocation3], 1 }
 0x142   :  { %181 = vsyncpa [#allocation6], 1 }
 0x143   :  { %182 = vsyncpa [#allocation4], 1 }

// kernel: tpu_custom_call.1
= control target key start
LH: loop header
LB: loop body
LE: loop exit
PB: predicated region body
PF: predicated region fallthrough
CT: control target
= control target key end

     0   :  { %9 = vsyncpa [#allocation3], 0  ;;  %s467_s0 = inlined_call_operand.hbm [shape: f32[16,128], index: 0, kind: input, shape index: {}]   ;;  %s468_s1 = inlined_call_operand.hbm [shape: f32[16,128], index: 1, kind: input, shape index: {}]   ;;  %s469_s2 = inlined_call_operand.hbm [shape: f32[128,128], index: 2, kind: input, shape index: {}]   ;;  %s470_s3 = inlined_call_operand.vmem [shape: f32[1,128], index: 3, kind: input, shape index: {}]   ;;  %s471_s4 = inlined_call_operand.hbm [shape: f32[1,8,128], index: 4, kind: output, shape index: {}]  }
   0x1   :  { %10 = vsyncpa [#allocation6], 0 }
   0x2   :  { %11 = vsyncpa [#allocation4], 0  ;;  %s369_s15 = smov [#allocation5]   ;;  %s370_s17 = smov [#allocation2]  }
   0x3   :  { %s29_s16 = sshll.u32 %s369_s15, 4  ;;  %s17_s18 = sshll.u32 %s370_s17, 4  ;;  %s30_s16 = int_to_ptr.vmem [resolvable:$true] %s29_s16  ;;  %s400_s18 = int_to_ptr.vmem [resolvable:$true] %s17_s18 }
   0x4   :  { %s275_s21 = scalar_lea.hbm %s468_s1, 256 }
   0x5   :  { %p276_p0 = scmp.ne.s32.totalorder %s468_s1, %s275_s21  ;;  %p279_p1 = scmp.lt.u32.totalorder %s275_s21, %s468_s1 }
   0x7   :  { %p281_p2 = pnand %p279_p1, %p276_p0 }
   0x9   :  { %284 = shalt.err (!%p281_p2)
}
   0xa   :  { %s285_s26 = scalar_lea.vmem %s30_s16, 256  ;;  %p290_p4 = scmp.lt.s32.totalorder %s30_s16, %s30_s16 }
   0xb   :  { %p286_p3 = scmp.ne.s32.totalorder %s30_s16, %s285_s26  ;;  %p291_p5 = scmp.lt.s32.totalorder %s285_s26, %s285_s26 }
   0xd   :  { %p292_p6 = por %p291_p5, %p290_p4 }
   0xf   :  { %p293_p7 = pnand %p292_p6, %p286_p3 }
  0x11   :  { %296 = shalt.err (!%p293_p7)
}
  0x12   :  { %s371_s27 = smov 128   ;;  %s372_s28 = smov 8  }
  0x13   :  { %35 = dma.hbm_to_vmem [thread:$0]  %s468_s1, 256, %s30_s16, [#allocation6], %s371_s27, %s371_s27, %s372_s28  }
  0x14   :  { %s297_s7 = scalar_lea.hbm %s467_s0, 256 }
  0x15   :  { %p298_p8 = scmp.ne.s32.totalorder %s467_s0, %s297_s7  ;;  %p301_p9 = scmp.lt.u32.totalorder %s297_s7, %s467_s0 }
  0x17   :  { %p303_p10 = pnand %p301_p9, %p298_p8 }
  0x19   :  { %306 = shalt.err (!%p303_p10)
}
  0x1a   :  { %s307_s12 = scalar_lea.vmem %s400_s18, 256  ;;  %p312_p12 = scmp.lt.s32.totalorder %s400_s18, %s400_s18 }
  0x1b   :  { %p308_p11 = scmp.ne.s32.totalorder %s400_s18, %s307_s12  ;;  %p313_p13 = scmp.lt.s32.totalorder %s307_s12, %s307_s12 }
  0x1d   :  { %p314_p0 = por %p313_p13, %p312_p12 }
  0x1f   :  { %p315_p1 = pnand %p314_p0, %p308_p11 }
  0x21   :  { %318 = shalt.err (!%p315_p1)
}
  0x22   :  { %23 = dma.hbm_to_vmem [thread:$0]  %s467_s0, 256, %s400_s18, [#allocation3], %s371_s27, %s371_s27, %s372_s28  }
  0x23   :  { %s373_s14 = smov [#allocation7]   ;;  %s319_s19 = scalar_lea.hbm %s469_s2, 2048 }
  0x24   :  { %s41_s15 = sshll.u32 %s373_s14, 4  ;;  %p320_p2 = scmp.ne.s32.totalorder %s469_s2, %s319_s19  ;;  %s42_s15 = int_to_ptr.vmem [resolvable:$true] %s41_s15 }
  0x25   :  { %p323_p3 = scmp.lt.u32.totalorder %s319_s19, %s469_s2 }
  0x27   :  { %p325_p4 = pnand %p323_p3, %p320_p2 }
  0x29   :  { %328 = shalt.err (!%p325_p4)
}
  0x2a   :  { %s329_s24 = scalar_lea.vmem %s42_s15, 2048  ;;  %p334_p6 = scmp.lt.s32.totalorder %s42_s15, %s42_s15 }
  0x2b   :  { %p330_p5 = scmp.ne.s32.totalorder %s42_s15, %s329_s24  ;;  %p335_p7 = scmp.lt.s32.totalorder %s329_s24, %s329_s24 }
  0x2d   :  { %p336_p8 = por %p335_p7, %p334_p6 }
  0x2f   :  { %p337_p9 = pnand %p336_p8, %p330_p5 }
  0x31   :  { %340 = shalt.err (!%p337_p9)
}
  0x32   :  { %47 = dma.hbm_to_vmem [thread:$0]  %s469_s2, 2048, %s42_s15, [#allocation6], %s371_s27, %s371_s27, %s372_s28  }
  0x33   :  { %363 = dma.done.wait [#allocation3], 256  }
  0x34   :  { %364 = vsyncadd [#allocation3], 4294967040 }
  0x35   :  { %365 = dma.done.wait [#allocation6], 2304  }
  0x36   :  { %366 = vsyncadd [#allocation6], 4294964992  ;;  %v61_v0 = vld [vmem:[#allocation7] sm:$0xff]  ;;  %v62_v1 = vld [vmem:[#allocation7 + $0x8] sm:$0xff]  ;;  %s374_s26 = smov [#allocation8]  }
  0x37   :  { %v63_v2 = vld [vmem:[#allocation7 + $0x10] sm:$0xff]  ;;  %v237_v3 = vpack.c.bf16 %v62_v1, %v61_v0  ;;  %v64_v4 = vld [vmem:[#allocation7 + $0x18] sm:$0xff]  ;;  %v65_v6 = vld [vmem:[#allocation7 + $0x20] sm:$0xff]  ;;  %s173_s27 = sshll.u32 %s374_s26, 4  ;;  %s174_s27 = int_to_ptr.vmem [resolvable:$true] %s173_s27 }
  0x38   :  { %v241_v5 = vpack.c.bf16 %v64_v4, %v63_v2  ;;  %v66_v7 = vld [vmem:[#allocation7 + $0x28] sm:$0xff]  ;;  %v59_v9 = vld [vmem:[#allocation5] sm:$0xff]  ;;  %v68_v11 = vld [vmem:[#allocation7 + $0x38] sm:$0xff]  ;;  %s341_s28 = scalar_lea.vmem %s174_s27, 128  ;;  %p346_p11 = scmp.lt.s32.totalorder %s174_s27, %s174_s27 }
  0x39   :  { %238 = vmatprep.subr.bf16.mxu0 %v237_v3  ;;  %v245_v8 = vpack.c.bf16 %v66_v7, %v65_v6  ;;  %v67_v10 = vld [vmem:[#allocation7 + $0x30] sm:$0xff]  ;;  %234 = vmatprep.mubr.f32.mxu0 %v59_v9  ;;  %v69_v13 = vld [vmem:[#allocation7 + $0x40] sm:$0xff]  ;;  %v70_v14 = vld [vmem:[#allocation7 + $0x48] sm:$0xff]  ;;  %p342_p10 = scmp.ne.s32.totalorder %s174_s27, %s341_s28  ;;  %p347_p12 = scmp.lt.s32.totalorder %s341_s28, %s341_s28 }
  0x3a   :  { %240 = vmatpush3.bf16.msra.mxu0 %v237_v3  ;;  %v249_v12 = vpack.c.bf16 %v68_v11, %v67_v10  ;;  %v253_v15 = vpack.c.bf16 %v70_v14, %v69_v13  ;;  %v71_v16 = vld [vmem:[#allocation7 + $0x50] sm:$0xff]  ;;  %v72_v17 = vld [vmem:[#allocation7 + $0x58] sm:$0xff]  ;;  %v73_v19 = vld [vmem:[#allocation7 + $0x60] sm:$0xff] }
  0x3b   :  { %242 = vmatprep.subr.bf16.mxu0 %v241_v5  ;;  %v257_v18 = vpack.c.bf16 %v72_v17, %v71_v16  ;;  %v74_v20 = vld [vmem:[#allocation7 + $0x68] sm:$0xff]  ;;  %v75_v22 = vld [vmem:[#allocation7 + $0x70] sm:$0xff]  ;;  %v76_v23 = vld [vmem:[#allocation7 + $0x78] sm:$0xff]  ;;  %p348_p13 = por %p347_p12, %p346_p11 }
  0x3c   :  { %v261_v21 = vpack.c.bf16 %v74_v20, %v73_v19  ;;  %v265_v24 = vpack.c.bf16 %v76_v23, %v75_v22  ;;  %v60_v25 = vld [vmem:[#allocation5 + $0x8] sm:$0xff]  ;;  %v183_v26 = vld [vmem:[%s470_s3] ss:$0 sm:$0xff]  ;;  %v160_v28 = vld [vmem:[#allocation2 + $0x8] sm:$0xff] }
  0x3d   :  { %v159_v31 = vld [vmem:[#allocation2] sm:$0xff]  ;;  %p349_p0 = pnand %p348_p13, %p342_p10 }
  0x3e   :  { %244 = vmatpush3.bf16.msra.mxu0 %v241_v5 }
  0x3f   :  { %246 = vmatprep.subr.bf16.mxu0 %v245_v8 }
  0x42   :  { %248 = vmatpush3.bf16.msra.mxu0 %v245_v8 }
  0x43   :  { %250 = vmatprep.subr.bf16.mxu0 %v249_v12 }
  0x46   :  { %252 = vmatpush3.bf16.msra.mxu0 %v249_v12 }
  0x47   :  { %254 = vmatprep.subr.bf16.mxu0 %v253_v15 }
  0x4a   :  { %256 = vmatpush3.bf16.msra.mxu0 %v253_v15 }
  0x4b   :  { %258 = vmatprep.subr.bf16.mxu0 %v257_v18 }
  0x4e   :  { %260 = vmatpush3.bf16.msra.mxu0 %v257_v18 }
  0x4f   :  { %262 = vmatprep.subr.bf16.mxu0 %v261_v21 }
  0x52   :  { %264 = vmatpush3.bf16.msra.mxu0 %v261_v21 }
  0x53   :  { %266 = vmatprep.subr.bf16.mxu0 %v265_v24 }
  0x56   :  { %268 = vmatpush3.bf16.msra.mxu0 %v265_v24 }
  0x59   :  { %235 = vmatmul.mubr.f32.vlgmr.msra.gmra.mrb[0].mxu0 %v60_v25 }
 0x12c   :  { %v236_v27 = vpop.f32.mrb[0].mxu0 }
 0x12d   :  { %v156_v29 = vadd.f32 %v236_v27, %v183_v26  ;;  %v150_v30 = vpop.f32.mrb[1].mxu0 }
 0x12e   :  { %v151_v32 = vadd.f32 %v183_v26, %v150_v30 }
 0x12f   :  { %v162_v33 = vsub.f32 %v160_v28, %v156_v29 }
 0x130   :  { %v161_v34 = vsub.f32 %v159_v31, %v151_v32 }
 0x131   :  { %v164_v35 = vmul.f32 %v162_v33, %v162_v33 }
 0x132   :  { %v163_v36 = vmul.f32 %v161_v34, %v161_v34 }
 0x134   :  { %v165_v37 = vadd.f32 %v164_v35, %v163_v36 }
 0x136   :  { %166 = vst [vmem:[#allocation8] sm:$0xff] %v165_v37 }
 0x137   :  { %352 = shalt.err (!%p349_p0)
}
 0x138   :  { %s353_s30 = scalar_lea.hbm %s471_s4, 128 }
 0x139   :  { %p354_p1 = scmp.ne.s32.totalorder %s471_s4, %s353_s30  ;;  %p357_p2 = scmp.lt.u32.totalorder %s353_s30, %s471_s4 }
 0x13b   :  { %p359_p3 = pnand %p357_p2, %p354_p1 }
 0x13d   :  { %362 = shalt.err (!%p359_p3)
}
 0x13e   :  { %176 = dma.vmem_to_hbm [thread:$0]  %s174_s27, 128, %s471_s4, [#allocation4]  }
 0x13f   :  { %367 = dma.done.wait [#allocation4], 128  }
 0x140   :  { %368 = vsyncadd [#allocation4], 4294967168 }
 0x141   :  { %180 = vsyncpa [#allocation3], 1 }
 0x142   :  { %181 = vsyncpa [#allocation6], 1 }
 0x143   :  { %182 = vsyncpa [#allocation4], 1 }

</bundles_post_ra>
